<compile_context>
chip_gen: v7x
topology: tpu7x:2x2x1
jax: 0.10.0
libtpu: 0.0.40
codegen_flags: <defaults>
</compile_context>

<pallas_src>
import functools

import jax
import jax.numpy as jnp
import numpy as np
from jax import lax
from jax.experimental import pallas as pl
from jax.experimental.pallas import tpu as pltpu


def resse_1d_kernel(xcat_ref, w1_ref, b1_ref, w2_ref, b2_ref, w3_ref, b3_ref,
                    d1w_ref, d1b_ref, d2w_ref, d2b_ref, avg_ref, bc_ref,
                    o_ref, buf_ref, *, tb, seq, pool, diff, cin):
    L = seq
    co = o_ref.shape[1]
    mdt = w1_ref.dtype                       # MXU input dtype (f32 or bf16)

    xcat = xcat_ref[...]                     # (tb*L, 3*cin)  im2col'd input

    # ---- conv_1 (+bias+BN folded) -> relu: one (tb*L, 3*cin)@(3*cin, co) matmul
    h = jnp.dot(xcat, w1_ref[...], preferred_element_type=jnp.float32) + b1_ref[...]
    h = jnp.maximum(h, 0.0)                  # (tb*L, co) f32

    # ---- conv_2 (+BN folded): taps as shifted windows of a VMEM-staged copy of
    # h; per-batch boundary rows (zero padding of the conv) are masked to 0.
    row = lax.broadcasted_iota(jnp.int32, (tb * L, co), 0)
    first = (row % L) == 0
    last = (row % L) == (L - 1)
    buf_ref[pl.ds(8, tb * L), :] = h                              # aligned store
    h_m1 = jnp.where(first, 0.0, buf_ref[pl.ds(7, tb * L), :])    # h[l-1]
    h_p1 = jnp.where(last, 0.0, buf_ref[pl.ds(9, tb * L), :])     # h[l+1]
    out = (jnp.dot(h_m1.astype(mdt), w2_ref[0], preferred_element_type=jnp.float32)
           + jnp.dot(h.astype(mdt), w2_ref[1], preferred_element_type=jnp.float32)
           + jnp.dot(h_p1.astype(mdt), w2_ref[2], preferred_element_type=jnp.float32)
           + b2_ref[...])                                         # (tb*L, co) f32

    # ---- Squeeze-Excite: per-batch mean over L via a (tb, tb*L) matmul,
    # dense->relu->dense->sigmoid, then broadcast back with a (tb*L, tb) matmul.
    se = jnp.dot(avg_ref[...], out, preferred_element_type=jnp.float32)   # (tb, co)
    se = jnp.maximum(
        jnp.dot(se.astype(mdt), d1w_ref[...], preferred_element_type=jnp.float32)
        + d1b_ref[...], 0.0)
    se = jax.nn.sigmoid(
        jnp.dot(se.astype(mdt), d2w_ref[...], preferred_element_type=jnp.float32)
        + d2b_ref[...])
    gate = jnp.dot(bc_ref[...], se, preferred_element_type=jnp.float32)   # (tb*L, co)
    out = out * gate

    # ---- shortcut (projection conv_3+bn_3 folded, or identity)
    if diff:
        sc = jnp.dot(xcat, w3_ref[...], preferred_element_type=jnp.float32) + b3_ref[...]
    else:
        # identity: the center tap of the im2col'd input is exactly x (cin == co).
        sc = xcat[:, cin:2 * cin].astype(jnp.float32)
    out = jnp.maximum(out + sc, 0.0)

    # ---- MaxPool1d(pool), floor mode: `pool` strided reads from VMEM scratch.
    lp = o_ref.shape[0] // tb
    buf_ref[pl.ds(0, tb * L), :] = out
    for b in range(tb):
        r = buf_ref[pl.ds(b * L, lp, stride=pool), :]
        for j in range(1, pool):
            r = jnp.maximum(r, buf_ref[pl.ds(b * L + j, lp, stride=pool), :])
        o_ref[pl.ds(b * lp, lp), :] = r


def resse_1d_forward(x_ncl, p, pooling=3, *, block_batch=8, mxu_dtype=jnp.float32):
    """x_ncl: (N, Cin, L) torch layout.  Returns (N, Cout, L // pooling)."""
    n, cin, l = x_ncl.shape
    cout = p["w1"].shape[0]
    lp = l // pooling
    f32 = jnp.float32

    # Batch tile: largest divisor of n (<= block_batch) keeping sublane dims
    # 8-aligned; fall back to the whole batch (block == full array is always legal).
    tb = None
    for d in range(min(n, block_batch), 0, -1):
        if n % d == 0 and (d * l) % 8 == 0 and (d * lp) % 8 == 0:
            tb = d
            break
    if tb is None:
        tb = n
    grid = (n // tb,)

    # ---- im2col the k=3 / pad=1 input in the wrapper (cheap XLA work).
    x_nlc = jnp.transpose(x_ncl, (0, 2, 1)).astype(f32)           # (n, l, cin)
    xp = jnp.pad(x_nlc, ((0, 0), (1, 1), (0, 0)))                 # zero pad along L
    xcat = jnp.concatenate(
        [xp[:, 0:l, :], xp[:, 1:l + 1, :], xp[:, 2:l + 2, :]], axis=-1)
    xcat = xcat.reshape(n * l, 3 * cin).astype(mxu_dtype)         # (n*l, 3*cin)

    # ---- fold conv bias + BN (inference stats) into the conv weights.
    def fold_bn(g, be, m, v, eps=1e-5):
        s = g / jnp.sqrt(v + eps)
        return s, be - m * s

    def fold_conv(w, b, s, t):            # torch w: (co, ci, 3)
        wf = jnp.transpose(w, (2, 1, 0)).reshape(3 * w.shape[1], w.shape[0])
        wf = wf * s[None, :]
        return wf.astype(mxu_dtype), (b * s + t).reshape(1, -1).astype(f32)

    s1, t1 = fold_bn(p["g1"], p["be1"], p["m1"], p["v1"])
    s2, t2 = fold_bn(p["g2"], p["be2"], p["m2"], p["v2"])
    w1f, b1f = fold_conv(p["w1"], p["b1"], s1, t1)
    w2t = (jnp.transpose(p["w2"], (2, 1, 0)) * s2[None, None, :]).astype(mxu_dtype)
    b2f = (p["b2"] * s2 + t2).reshape(1, -1).astype(f32)

    diff = bool(p["diff"])
    if diff:
        s3, t3 = fold_bn(p["g3"], p["be3"], p["m3"], p["v3"])
        w3f, b3f = fold_conv(p["w3"], p["b3"], s3, t3)
        w3_spec = pl.BlockSpec((3 * cin, cout), lambda i: (0, 0))
    else:
        w3f = jnp.zeros((1, cout), mxu_dtype)     # placeholder, statically skipped
        b3f = jnp.zeros((1, cout), f32)
        w3_spec = pl.BlockSpec((1, cout), lambda i: (0, 0))

    d1w = p["d1w"].T.astype(mxu_dtype)
    d1b = p["d1b"].reshape(1, -1).astype(f32)
    d2w = p["d2w"].T.astype(mxu_dtype)
    d2b = p["d2b"].reshape(1, -1).astype(f32)

    # block-diagonal per-batch mean / broadcast matrices for the SE block.
    eye = jnp.eye(tb, dtype=f32)
    avg = jnp.repeat(eye, l, axis=1) / float(l)   # (tb, tb*l)
    bc = jnp.repeat(eye, l, axis=0)               # (tb*l, tb)

    vec = pl.BlockSpec((1, cout), lambda i: (0, 0))
    in_specs = [
        pl.BlockSpec((tb * l, 3 * cin), lambda i: (i, 0)),          # xcat
        pl.BlockSpec((3 * cin, cout), lambda i: (0, 0)), vec,       # w1, b1
        pl.BlockSpec((3, cout, cout), lambda i: (0, 0, 0)), vec,    # w2, b2
        w3_spec, vec,                                               # w3, b3
        pl.BlockSpec((cout, cout), lambda i: (0, 0)), vec,          # d1w, d1b
        pl.BlockSpec((cout, cout), lambda i: (0, 0)), vec,          # d2w, d2b
        pl.BlockSpec((tb, tb * l), lambda i: (0, 0)),               # avg
        pl.BlockSpec((tb * l, tb), lambda i: (0, 0)),               # bc
    ]

    kernel = functools.partial(resse_1d_kernel, tb=tb, seq=l, pool=pooling,
                               diff=diff, cin=cin)

    out_flat = pl.pallas_call(
        kernel,
        out_shape=jax.ShapeDtypeStruct((n * lp, cout), f32),
        grid_spec=pltpu.PrefetchScalarGridSpec(
            num_scalar_prefetch=0,
            grid=grid,
            in_specs=in_specs,
            out_specs=pl.BlockSpec((tb * lp, cout), lambda i: (i, 0)),
            scratch_shapes=[pltpu.VMEM((tb * l + 16, cout), f32)],
        ),
        compiler_params=pltpu.CompilerParams(
            dimension_semantics=("parallel",)),     # independent batch tiles
    )(xcat, w1f, b1f, w2t, b2f, w3f, b3f, d1w, d1b, d2w, d2b, avg, bc)

    return jnp.transpose(out_flat.reshape(n, lp, cout), (0, 2, 1))


# ---------------------- pure-JAX reference (for checking) ----------------------
def _conv1d_ref(x, w, b):
    y = lax.conv_general_dilated(x, w, window_strides=(1,), padding=[(1, 1)],
                                 dimension_numbers=("NCH", "OIH", "NCH"))
    return y + b[None, :, None]


def _bn_ref(x, g, be, m, v, eps=1e-5):
    return g[None, :, None] * (x - m[None, :, None]) / jnp.sqrt(v[None, :, None] + eps) \
        + be[None, :, None]


def resse_1d_reference(x, p, pooling=3):
    h = jax.nn.relu(_bn_ref(_conv1d_ref(x, p["w1"], p["b1"]),
                            p["g1"], p["be1"], p["m1"], p["v1"]))
    out = _bn_ref(_conv1d_ref(h, p["w2"], p["b2"]),
                  p["g2"], p["be2"], p["m2"], p["v2"])
    se = out.mean(axis=-1)                               # AvgPool1d(L) + squeeze
    se = jax.nn.relu(se @ p["d1w"].T + p["d1b"])
    se = jax.nn.sigmoid(se @ p["d2w"].T + p["d2b"])
    out = out * se[:, :, None]
    if p["diff"]:
        sc = _bn_ref(_conv1d_ref(x, p["w3"], p["b3"]),
                     p["g3"], p["be3"], p["m3"], p["v3"])
    else:
        sc = x
    out = jax.nn.relu(sc + out)
    n, c, l = out.shape
    lp = l // pooling
    return out[:, :, :lp * pooling].reshape(n, c, lp, pooling).max(axis=-1)


# ------------------------------- demo / check ----------------------------------
def make_params(key, cin, cout, diff):
    ks = jax.random.split(key, 24)

    def nrm(k, shape, scale=0.3):
        return scale * jax.random.normal(k, shape, jnp.float32)

    p = dict(
        diff=diff,
        w1=nrm(ks[0], (cout, cin, 3)), b1=nrm(ks[1], (cout,)),
        g1=1.0 + 0.1 * jax.random.normal(ks[2], (cout,), jnp.float32),
        be1=0.1 * jax.random.normal(ks[3], (cout,), jnp.float32),
        m1=0.1 * jax.random.normal(ks[4], (cout,), jnp.float32),
        v1=0.5 + jax.random.uniform(ks[5], (cout,), jnp.float32),
        w2=nrm(ks[6], (cout, cout, 3)), b2=nrm(ks[7], (cout,)),
        g2=1.0 + 0.1 * jax.random.normal(ks[8], (cout,), jnp.float32),
        be2=0.1 * jax.random.normal(ks[9], (cout,), jnp.float32),
        m2=0.1 * jax.random.normal(ks[10], (cout,), jnp.float32),
        v2=0.5 + jax.random.uniform(ks[11], (cout,), jnp.float32),
        d1w=nrm(ks[18], (cout, cout)), d1b=nrm(ks[19], (cout,)),
        d2w=nrm(ks[20], (cout, cout)), d2b=nrm(ks[21], (cout,)),
    )
    if diff:
        p.update(
            w3=nrm(ks[12], (cout, cin, 3)), b3=nrm(ks[13], (cout,)),
            g3=1.0 + 0.1 * jax.random.normal(ks[14], (cout,), jnp.float32),
            be3=0.1 * jax.random.normal(ks[15], (cout,), jnp.float32),
            m3=0.1 * jax.random.normal(ks[16], (cout,), jnp.float32),
            v3=0.5 + jax.random.uniform(ks[17], (cout,), jnp.float32),
        )
    return p


if __name__ == "__main__":
    POOL = 3
    key = jax.random.PRNGKey(0)
    k_p1, k_p2, k_x1, k_x2 = jax.random.split(key, 4)

    # 1) projection shortcut (cin != cout), f32 MXU path
    N, CIN, COUT, L = 2, 4, 8, 24
    p1 = make_params(k_p1, CIN, COUT, diff=True)
    x1 = jax.random.normal(k_x1, (N, CIN, L), jnp.float32)    # torch layout (N, C, L)
    y1 = jax.block_until_ready(resse_1d_forward(x1, p1, pooling=POOL))
    y1_ref = resse_1d_reference(x1, p1, pooling=POOL)
    np.testing.assert_allclose(np.asarray(y1), np.asarray(y1_ref),
                               rtol=1e-4, atol=1e-4)

    # 2) same block with bf16 MXU inputs (v6e/v7x recommendation); f32 accumulate.
    y1b = jax.block_until_ready(
        resse_1d_forward(x1, p1, pooling=POOL, mxu_dtype=jnp.bfloat16))
    np.testing.assert_allclose(np.asarray(y1b), np.asarray(y1),
                               rtol=5e-2, atol=5e-2)

    # 3) identity shortcut (cin == cout, diff=False): conv_3 matmul statically skipped.
    C2 = 8
    p2 = make_params(k_p2, C2, C2, diff=False)
    x2 = jax.random.normal(k_x2, (N, C2, L), jnp.float32)
    y2 = jax.block_until_ready(resse_1d_forward(x2, p2, pooling=POOL))
    y2_ref = resse_1d_reference(x2, p2, pooling=POOL)
    np.testing.assert_allclose(np.asarray(y2), np.asarray(y2_ref),
                               rtol=1e-4, atol=1e-4)

    print("KERNEL_OK")
</pallas_src>

<mosaic_0001>
module attributes {stable_mosaic.version = 11 : i64} {
  func.func @resse_1d_kernel(%arg0: i32, %arg1: memref<48x12xf32, #tpu.memory_space<vmem>>, %arg2: memref<12x8xf32, #tpu.memory_space<vmem>>, %arg3: memref<1x8xf32, #tpu.memory_space<vmem>>, %arg4: memref<3x8x8xf32, #tpu.memory_space<vmem>>, %arg5: memref<1x8xf32, #tpu.memory_space<vmem>>, %arg6: memref<12x8xf32, #tpu.memory_space<vmem>>, %arg7: memref<1x8xf32, #tpu.memory_space<vmem>>, %arg8: memref<8x8xf32, #tpu.memory_space<vmem>>, %arg9: memref<1x8xf32, #tpu.memory_space<vmem>>, %arg10: memref<8x8xf32, #tpu.memory_space<vmem>>, %arg11: memref<1x8xf32, #tpu.memory_space<vmem>>, %arg12: memref<2x48xf32, #tpu.memory_space<vmem>>, %arg13: memref<48x2xf32, #tpu.memory_space<vmem>>, %arg14: memref<16x8xf32, #tpu.memory_space<vmem>>, %arg15: memref<64x8xf32, #tpu.memory_space<vmem>>) attributes {dimension_semantics = [#tpu.dimension_semantics<parallel>], iteration_bounds = array<i64: 1>, scalar_prefetch = 0 : i64, scratch_operands = 1 : i64, tpu.core_type = #tpu.core_type<tc>, window_params = [{transform_indices = @transform_0, window_bounds = array<i64: 48, 12>}, {pipeline_mode = #tpu.pipeline_mode<synchronous>, transform_indices = @transform_1, window_bounds = array<i64: 12, 8>}, {pipeline_mode = #tpu.pipeline_mode<synchronous>, transform_indices = @transform_2, window_bounds = array<i64: 1, 8>}, {pipeline_mode = #tpu.pipeline_mode<synchronous>, transform_indices = @transform_3, window_bounds = array<i64: 3, 8, 8>}, {pipeline_mode = #tpu.pipeline_mode<synchronous>, transform_indices = @transform_4, window_bounds = array<i64: 1, 8>}, {pipeline_mode = #tpu.pipeline_mode<synchronous>, transform_indices = @transform_5, window_bounds = array<i64: 12, 8>}, {pipeline_mode = #tpu.pipeline_mode<synchronous>, transform_indices = @transform_6, window_bounds = array<i64: 1, 8>}, {pipeline_mode = #tpu.pipeline_mode<synchronous>, transform_indices = @transform_7, window_bounds = array<i64: 8, 8>}, {pipeline_mode = #tpu.pipeline_mode<synchronous>, transform_indices = @transform_8, window_bounds = array<i64: 1, 8>}, {pipeline_mode = #tpu.pipeline_mode<synchronous>, transform_indices = @transform_9, window_bounds = array<i64: 8, 8>}, {pipeline_mode = #tpu.pipeline_mode<synchronous>, transform_indices = @transform_10, window_bounds = array<i64: 1, 8>}, {pipeline_mode = #tpu.pipeline_mode<synchronous>, transform_indices = @transform_11, window_bounds = array<i64: 2, 48>}, {pipeline_mode = #tpu.pipeline_mode<synchronous>, transform_indices = @transform_12, window_bounds = array<i64: 48, 2>}, {transform_indices = @transform_13, window_bounds = array<i64: 16, 8>}]} {
    %c0 = arith.constant 0 : index
    %c0_0 = arith.constant 0 : index
    %0 = vector.load %arg1[%c0, %c0_0] : memref<48x12xf32, #tpu.memory_space<vmem>>, vector<48x12xf32>
    %c0_1 = arith.constant 0 : index
    %c0_2 = arith.constant 0 : index
    %1 = vector.load %arg2[%c0_1, %c0_2] : memref<12x8xf32, #tpu.memory_space<vmem>>, vector<12x8xf32>
    %cst = arith.constant dense<0.000000e+00> : vector<48x8xf32>
    %2 = tpu.matmul %0, %1, %cst {dimension_numbers = #tpu.dot_dimension_numbers<[1], [0], [0], [1], [0, 0, 1, 1], [], []>} : vector<48x12xf32>, vector<12x8xf32>, vector<48x8xf32> -> vector<48x8xf32>
    %c0_3 = arith.constant 0 : index
    %c0_4 = arith.constant 0 : index
    %3 = vector.load %arg3[%c0_3, %c0_4] : memref<1x8xf32, #tpu.memory_space<vmem>>, vector<1x8xf32>
    %4 = vector.broadcast %3 : vector<1x8xf32> to vector<48x8xf32>
    %5 = arith.addf %2, %4 : vector<48x8xf32>
    %cst_5 = arith.constant 0.000000e+00 : f32
    %6 = vector.broadcast %cst_5 : f32 to vector<48x8xf32>
    %7 = arith.maximumf %5, %6 : vector<48x8xf32>
    %8 = tpu.iota {dimensions = array<i32: 0>} : vector<48x8xi32>
    %c24_i32 = arith.constant 24 : i32
    %c0_i32 = arith.constant 0 : i32
    %9 = arith.cmpi eq, %c24_i32, %c0_i32 : i32
    %c1_i32 = arith.constant 1 : i32
    %10 = arith.select %9, %c1_i32, %c24_i32 : i32
    %11 = vector.broadcast %10 : i32 to vector<48x8xi32>
    %12 = arith.remsi %8, %11 : vector<48x8xi32>
    %c0_i32_6 = arith.constant 0 : i32
    %13 = vector.broadcast %c0_i32_6 : i32 to vector<48x8xi32>
    %14 = arith.cmpi ne, %12, %13 : vector<48x8xi32>
    %c0_i32_7 = arith.constant 0 : i32
    %15 = vector.broadcast %c0_i32_7 : i32 to vector<48x8xi32>
    %16 = arith.cmpi slt, %12, %15 : vector<48x8xi32>
    %c0_i32_8 = arith.constant 0 : i32
    %17 = arith.cmpi slt, %10, %c0_i32_8 : i32
    %18 = vector.broadcast %17 : i1 to vector<48x8xi1>
    %19 = vector.broadcast %18 : vector<48x8xi1> to vector<48x8xi1>
    %20 = arith.xori %16, %19 : vector<48x8xi1>
    %21 = arith.andi %20, %14 : vector<48x8xi1>
    %22 = vector.broadcast %10 : i32 to vector<48x8xi32>
    %23 = arith.addi %12, %22 : vector<48x8xi32>
    %24 = arith.select %21, %23, %12 : vector<48x8xi1>, vector<48x8xi32>
    %c0_i32_9 = arith.constant 0 : i32
    %25 = vector.broadcast %c0_i32_9 : i32 to vector<48x8xi32>
    %26 = arith.cmpi eq, %24, %25 : vector<48x8xi32>
    %c24_i32_10 = arith.constant 24 : i32
    %c0_i32_11 = arith.constant 0 : i32
    %27 = arith.cmpi eq, %c24_i32_10, %c0_i32_11 : i32
    %c1_i32_12 = arith.constant 1 : i32
    %28 = arith.select %27, %c1_i32_12, %c24_i32_10 : i32
    %29 = vector.broadcast %28 : i32 to vector<48x8xi32>
    %30 = arith.remsi %8, %29 : vector<48x8xi32>
    %c0_i32_13 = arith.constant 0 : i32
    %31 = vector.broadcast %c0_i32_13 : i32 to vector<48x8xi32>
    %32 = arith.cmpi ne, %30, %31 : vector<48x8xi32>
    %c0_i32_14 = arith.constant 0 : i32
    %33 = vector.broadcast %c0_i32_14 : i32 to vector<48x8xi32>
    %34 = arith.cmpi slt, %30, %33 : vector<48x8xi32>
    %c0_i32_15 = arith.constant 0 : i32
    %35 = arith.cmpi slt, %28, %c0_i32_15 : i32
    %36 = vector.broadcast %35 : i1 to vector<48x8xi1>
    %37 = vector.broadcast %36 : vector<48x8xi1> to vector<48x8xi1>
    %38 = arith.xori %34, %37 : vector<48x8xi1>
    %39 = arith.andi %38, %32 : vector<48x8xi1>
    %40 = vector.broadcast %28 : i32 to vector<48x8xi32>
    %41 = arith.addi %30, %40 : vector<48x8xi32>
    %42 = arith.select %39, %41, %30 : vector<48x8xi1>, vector<48x8xi32>
    %c23_i32 = arith.constant 23 : i32
    %43 = vector.broadcast %c23_i32 : i32 to vector<48x8xi32>
    %44 = arith.cmpi eq, %42, %43 : vector<48x8xi32>
    %c8 = arith.constant 8 : index
    %c0_16 = arith.constant 0 : index
    %45 = vector.load %arg15[%c8, %c0_16] : memref<64x8xf32, #tpu.memory_space<vmem>>, vector<48x8xf32>
    tpu.vector_store %arg15[%c8, %c0_16], %7 {strides = array<i32>} : memref<64x8xf32, #tpu.memory_space<vmem>>, vector<48x8xf32>,
    %c7 = arith.constant 7 : index
    %c0_17 = arith.constant 0 : index
    %46 = vector.load %arg15[%c7, %c0_17] : memref<64x8xf32, #tpu.memory_space<vmem>>, vector<48x8xf32>
    %cst_18 = arith.constant 0.000000e+00 : f32
    %47 = vector.broadcast %cst_18 : f32 to vector<48x8xf32>
    %48 = arith.select %26, %47, %46 : vector<48x8xi1>, vector<48x8xf32>
    %c9 = arith.constant 9 : index
    %c0_19 = arith.constant 0 : index
    %49 = vector.load %arg15[%c9, %c0_19] : memref<64x8xf32, #tpu.memory_space<vmem>>, vector<48x8xf32>
    %cst_20 = arith.constant 0.000000e+00 : f32
    %50 = vector.broadcast %cst_20 : f32 to vector<48x8xf32>
    %51 = arith.select %44, %50, %49 : vector<48x8xi1>, vector<48x8xf32>
    %c0_21 = arith.constant 0 : index
    %c0_22 = arith.constant 0 : index
    %c0_23 = arith.constant 0 : index
    %52 = vector.load %arg4[%c0_21, %c0_22, %c0_23] : memref<3x8x8xf32, #tpu.memory_space<vmem>>, vector<1x8x8xf32>
    %53 = vector.shape_cast %52 : vector<1x8x8xf32> to vector<8x8xf32>
    %cst_24 = arith.constant dense<0.000000e+00> : vector<48x8xf32>
    %54 = tpu.matmul %48, %53, %cst_24 {dimension_numbers = #tpu.dot_dimension_numbers<[1], [0], [0], [1], [0, 0, 1, 1], [], []>} : vector<48x8xf32>, vector<8x8xf32>, vector<48x8xf32> -> vector<48x8xf32>
    %c1 = arith.constant 1 : index
    %c0_25 = arith.constant 0 : index
    %c0_26 = arith.constant 0 : index
    %55 = vector.load %arg4[%c1, %c0_25, %c0_26] : memref<3x8x8xf32, #tpu.memory_space<vmem>>, vector<1x8x8xf32>
    %56 = vector.shape_cast %55 : vector<1x8x8xf32> to vector<8x8xf32>
    %cst_27 = arith.constant dense<0.000000e+00> : vector<48x8xf32>
    %57 = tpu.matmul %7, %56, %cst_27 {dimension_numbers = #tpu.dot_dimension_numbers<[1], [0], [0], [1], [0, 0, 1, 1], [], []>} : vector<48x8xf32>, vector<8x8xf32>, vector<48x8xf32> -> vector<48x8xf32>
    %58 = arith.addf %54, %57 : vector<48x8xf32>
    %c2 = arith.constant 2 : index
    %c0_28 = arith.constant 0 : index
    %c0_29 = arith.constant 0 : index
    %59 = vector.load %arg4[%c2, %c0_28, %c0_29] : memref<3x8x8xf32, #tpu.memory_space<vmem>>, vector<1x8x8xf32>
    %60 = vector.shape_cast %59 : vector<1x8x8xf32> to vector<8x8xf32>
    %cst_30 = arith.constant dense<0.000000e+00> : vector<48x8xf32>
    %61 = tpu.matmul %51, %60, %cst_30 {dimension_numbers = #tpu.dot_dimension_numbers<[1], [0], [0], [1], [0, 0, 1, 1], [], []>} : vector<48x8xf32>, vector<8x8xf32>, vector<48x8xf32> -> vector<48x8xf32>
    %62 = arith.addf %58, %61 : vector<48x8xf32>
    %c0_31 = arith.constant 0 : index
    %c0_32 = arith.constant 0 : index
    %63 = vector.load %arg5[%c0_31, %c0_32] : memref<1x8xf32, #tpu.memory_space<vmem>>, vector<1x8xf32>
    %64 = vector.broadcast %63 : vector<1x8xf32> to vector<48x8xf32>
    %65 = arith.addf %62, %64 : vector<48x8xf32>
    %c0_33 = arith.constant 0 : index
    %c0_34 = arith.constant 0 : index
    %66 = vector.load %arg12[%c0_33, %c0_34] : memref<2x48xf32, #tpu.memory_space<vmem>>, vector<2x48xf32>
    %cst_35 = arith.constant dense<0.000000e+00> : vector<2x8xf32>
    %67 = tpu.matmul %66, %65, %cst_35 {dimension_numbers = #tpu.dot_dimension_numbers<[1], [0], [0], [1], [0, 0, 1, 1], [], []>} : vector<2x48xf32>, vector<48x8xf32>, vector<2x8xf32> -> vector<2x8xf32>
    %c0_36 = arith.constant 0 : index
    %c0_37 = arith.constant 0 : index
    %68 = vector.load %arg8[%c0_36, %c0_37] : memref<8x8xf32, #tpu.memory_space<vmem>>, vector<8x8xf32>
    %cst_38 = arith.constant dense<0.000000e+00> : vector<2x8xf32>
    %69 = tpu.matmul %67, %68, %cst_38 {dimension_numbers = #tpu.dot_dimension_numbers<[1], [0], [0], [1], [0, 0, 1, 1], [], []>} : vector<2x8xf32>, vector<8x8xf32>, vector<2x8xf32> -> vector<2x8xf32>
    %c0_39 = arith.constant 0 : index
    %c0_40 = arith.constant 0 : index
    %70 = vector.load %arg9[%c0_39, %c0_40] : memref<1x8xf32, #tpu.memory_space<vmem>>, vector<1x8xf32>
    %71 = vector.broadcast %70 : vector<1x8xf32> to vector<2x8xf32>
    %72 = arith.addf %69, %71 : vector<2x8xf32>
    %cst_41 = arith.constant 0.000000e+00 : f32
    %73 = vector.broadcast %cst_41 : f32 to vector<2x8xf32>
    %74 = arith.maximumf %72, %73 : vector<2x8xf32>
    %c0_42 = arith.constant 0 : index
    %c0_43 = arith.constant 0 : index
    %75 = vector.load %arg10[%c0_42, %c0_43] : memref<8x8xf32, #tpu.memory_space<vmem>>, vector<8x8xf32>
    %cst_44 = arith.constant dense<0.000000e+00> : vector<2x8xf32>
    %76 = tpu.matmul %74, %75, %cst_44 {dimension_numbers = #tpu.dot_dimension_numbers<[1], [0], [0], [1], [0, 0, 1, 1], [], []>} : vector<2x8xf32>, vector<8x8xf32>, vector<2x8xf32> -> vector<2x8xf32>
    %c0_45 = arith.constant 0 : index
    %c0_46 = arith.constant 0 : index
    %77 = vector.load %arg11[%c0_45, %c0_46] : memref<1x8xf32, #tpu.memory_space<vmem>>, vector<1x8xf32>
    %78 = vector.broadcast %77 : vector<1x8xf32> to vector<2x8xf32>
    %79 = arith.addf %76, %78 : vector<2x8xf32>
    %80 = arith.negf %79 : vector<2x8xf32>
    %81 = math.exp %80 : vector<2x8xf32>
    %cst_47 = arith.constant 1.000000e+00 : f32
    %82 = vector.broadcast %cst_47 : f32 to vector<2x8xf32>
    %83 = arith.addf %82, %81 : vector<2x8xf32>
    %84 = arith.divf %82, %83 : vector<2x8xf32>
    %c0_48 = arith.constant 0 : index
    %c0_49 = arith.constant 0 : index
    %85 = vector.load %arg13[%c0_48, %c0_49] : memref<48x2xf32, #tpu.memory_space<vmem>>, vector<48x2xf32>
    %cst_50 = arith.constant dense<0.000000e+00> : vector<48x8xf32>
    %86 = tpu.matmul %85, %84, %cst_50 {dimension_numbers = #tpu.dot_dimension_numbers<[1], [0], [0], [1], [0, 0, 1, 1], [], []>} : vector<48x2xf32>, vector<2x8xf32>, vector<48x8xf32> -> vector<48x8xf32>
    %87 = arith.mulf %65, %86 : vector<48x8xf32>
    %c0_51 = arith.constant 0 : index
    %c0_52 = arith.constant 0 : index
    %88 = vector.load %arg6[%c0_51, %c0_52] : memref<12x8xf32, #tpu.memory_space<vmem>>, vector<12x8xf32>
    %cst_53 = arith.constant dense<0.000000e+00> : vector<48x8xf32>
    %89 = tpu.matmul %0, %88, %cst_53 {dimension_numbers = #tpu.dot_dimension_numbers<[1], [0], [0], [1], [0, 0, 1, 1], [], []>} : vector<48x12xf32>, vector<12x8xf32>, vector<48x8xf32> -> vector<48x8xf32>
    %c0_54 = arith.constant 0 : index
    %c0_55 = arith.constant 0 : index
    %90 = vector.load %arg7[%c0_54, %c0_55] : memref<1x8xf32, #tpu.memory_space<vmem>>, vector<1x8xf32>
    %91 = vector.broadcast %90 : vector<1x8xf32> to vector<48x8xf32>
    %92 = arith.addf %89, %91 : vector<48x8xf32>
    %93 = arith.addf %87, %92 : vector<48x8xf32>
    %cst_56 = arith.constant 0.000000e+00 : f32
    %94 = vector.broadcast %cst_56 : f32 to vector<48x8xf32>
    %95 = arith.maximumf %93, %94 : vector<48x8xf32>
    %c0_57 = arith.constant 0 : index
    %c0_58 = arith.constant 0 : index
    %96 = vector.load %arg15[%c0_57, %c0_58] : memref<64x8xf32, #tpu.memory_space<vmem>>, vector<48x8xf32>
    tpu.vector_store %arg15[%c0_57, %c0_58], %95 {strides = array<i32>} : memref<64x8xf32, #tpu.memory_space<vmem>>, vector<48x8xf32>,
    %c0_59 = arith.constant 0 : index
    %c0_60 = arith.constant 0 : index
    %97 = tpu.strided_load %arg15[%c0_59, %c0_60] {strides = array<i32: 3, 1>} : memref<64x8xf32, #tpu.memory_space<vmem>>, vector<8x8xf32>
    %c1_61 = arith.constant 1 : index
    %c0_62 = arith.constant 0 : index
    %98 = tpu.strided_load %arg15[%c1_61, %c0_62] {strides = array<i32: 3, 1>} : memref<64x8xf32, #tpu.memory_space<vmem>>, vector<8x8xf32>
    %99 = arith.maximumf %97, %98 : vector<8x8xf32>
    %c2_63 = arith.constant 2 : index
    %c0_64 = arith.constant 0 : index
    %100 = tpu.strided_load %arg15[%c2_63, %c0_64] {strides = array<i32: 3, 1>} : memref<64x8xf32, #tpu.memory_space<vmem>>, vector<8x8xf32>
    %101 = arith.maximumf %99, %100 : vector<8x8xf32>
    %c0_65 = arith.constant 0 : index
    %c0_66 = arith.constant 0 : index
    %102 = vector.load %arg14[%c0_65, %c0_66] : memref<16x8xf32, #tpu.memory_space<vmem>>, vector<8x8xf32>
    tpu.vector_store %arg14[%c0_65, %c0_66], %101 {strides = array<i32>} : memref<16x8xf32, #tpu.memory_space<vmem>>, vector<8x8xf32>,
    %c24 = arith.constant 24 : index
    %c0_67 = arith.constant 0 : index
    %103 = tpu.strided_load %arg15[%c24, %c0_67] {strides = array<i32: 3, 1>} : memref<64x8xf32, #tpu.memory_space<vmem>>, vector<8x8xf32>
    %c25 = arith.constant 25 : index
    %c0_68 = arith.constant 0 : index
    %104 = tpu.strided_load %arg15[%c25, %c0_68] {strides = array<i32: 3, 1>} : memref<64x8xf32, #tpu.memory_space<vmem>>, vector<8x8xf32>
    %105 = arith.maximumf %103, %104 : vector<8x8xf32>
    %c26 = arith.constant 26 : index
    %c0_69 = arith.constant 0 : index
    %106 = tpu.strided_load %arg15[%c26, %c0_69] {strides = array<i32: 3, 1>} : memref<64x8xf32, #tpu.memory_space<vmem>>, vector<8x8xf32>
    %107 = arith.maximumf %105, %106 : vector<8x8xf32>
    %c8_70 = arith.constant 8 : index
    %c0_71 = arith.constant 0 : index
    %108 = vector.load %arg14[%c8_70, %c0_71] : memref<16x8xf32, #tpu.memory_space<vmem>>, vector<8x8xf32>
    tpu.vector_store %arg14[%c8_70, %c0_71], %107 {strides = array<i32>} : memref<16x8xf32, #tpu.memory_space<vmem>>, vector<8x8xf32>,
    return
  }
  func.func @transform_0(%arg0: i32) -> (i32, i32) {
    %c0_i32 = arith.constant 0 : i32
    %c0_i32_0 = arith.constant 0 : i32
    return %arg0, %c0_i32 : i32, i32
  }
  func.func @transform_1(%arg0: i32) -> (i32, i32) {
    %c0_i32 = arith.constant 0 : i32
    %c0_i32_0 = arith.constant 0 : i32
    %c0_i32_1 = arith.constant 0 : i32
    return %c0_i32, %c0_i32_0 : i32, i32
  }
  func.func @transform_2(%arg0: i32) -> (i32, i32) {
    %c0_i32 = arith.constant 0 : i32
    %c0_i32_0 = arith.constant 0 : i32
    %c0_i32_1 = arith.constant 0 : i32
    return %c0_i32, %c0_i32_0 : i32, i32
  }
  func.func @transform_3(%arg0: i32) -> (i32, i32, i32) {
    %c0_i32 = arith.constant 0 : i32
    %c0_i32_0 = arith.constant 0 : i32
    %c0_i32_1 = arith.constant 0 : i32
    %c0_i32_2 = arith.constant 0 : i32
    return %c0_i32, %c0_i32_0, %c0_i32_1 : i32, i32, i32
  }
  func.func @transform_4(%arg0: i32) -> (i32, i32) {
    %c0_i32 = arith.constant 0 : i32
    %c0_i32_0 = arith.constant 0 : i32
    %c0_i32_1 = arith.constant 0 : i32
    return %c0_i32, %c0_i32_0 : i32, i32
  }
  func.func @transform_5(%arg0: i32) -> (i32, i32) {
    %c0_i32 = arith.constant 0 : i32
    %c0_i32_0 = arith.constant 0 : i32
    %c0_i32_1 = arith.constant 0 : i32
    return %c0_i32, %c0_i32_0 : i32, i32
  }
  func.func @transform_6(%arg0: i32) -> (i32, i32) {
    %c0_i32 = arith.constant 0 : i32
    %c0_i32_0 = arith.constant 0 : i32
    %c0_i32_1 = arith.constant 0 : i32
    return %c0_i32, %c0_i32_0 : i32, i32
  }
  func.func @transform_7(%arg0: i32) -> (i32, i32) {
    %c0_i32 = arith.constant 0 : i32
    %c0_i32_0 = arith.constant 0 : i32
    %c0_i32_1 = arith.constant 0 : i32
    return %c0_i32, %c0_i32_0 : i32, i32
  }
  func.func @transform_8(%arg0: i32) -> (i32, i32) {
    %c0_i32 = arith.constant 0 : i32
    %c0_i32_0 = arith.constant 0 : i32
    %c0_i32_1 = arith.constant 0 : i32
    return %c0_i32, %c0_i32_0 : i32, i32
  }
  func.func @transform_9(%arg0: i32) -> (i32, i32) {
    %c0_i32 = arith.constant 0 : i32
    %c0_i32_0 = arith.constant 0 : i32
    %c0_i32_1 = arith.constant 0 : i32
    return %c0_i32, %c0_i32_0 : i32, i32
  }
  func.func @transform_10(%arg0: i32) -> (i32, i32) {
    %c0_i32 = arith.constant 0 : i32
    %c0_i32_0 = arith.constant 0 : i32
    %c0_i32_1 = arith.constant 0 : i32
    return %c0_i32, %c0_i32_0 : i32, i32
  }
  func.func @transform_11(%arg0: i32) -> (i32, i32) {
    %c0_i32 = arith.constant 0 : i32
    %c0_i32_0 = arith.constant 0 : i32
    %c0_i32_1 = arith.constant 0 : i32
    return %c0_i32, %c0_i32_0 : i32, i32
  }
  func.func @transform_12(%arg0: i32) -> (i32, i32) {
    %c0_i32 = arith.constant 0 : i32
    %c0_i32_0 = arith.constant 0 : i32
    %c0_i32_1 = arith.constant 0 : i32
    return %c0_i32, %c0_i32_0 : i32, i32
  }
  func.func @transform_13(%arg0: i32) -> (i32, i32) {
    %c0_i32 = arith.constant 0 : i32
    %c0_i32_0 = arith.constant 0 : i32
    return %arg0, %c0_i32 : i32, i32
  }
}

</mosaic_0001>

<bundles_post_ra>
// kernel: tpu_custom_call.1
= control target key start
LH: loop header
LB: loop body
LE: loop exit
PB: predicated region body
PF: predicated region fallthrough
CT: control target
= control target key end

     0   :  { %vm78_vm0 = vcmask 1043456   ;;  %vm59_vm1 = vcmask 97280   ;;  %vm1467_vm2 = vmmov 1   ;;  %v183_v12 = vlaneseq  ;;  %s1806_s1 = inlined_call_operand.vmem [shape: f32[12,8], index: 1, kind: input, shape index: {}]   ;;  %s1807_s0 = inlined_call_operand.vmem [shape: f32[48,12], index: 0, kind: input, shape index: {}]   ;;  %s1808_s3 = inlined_call_operand.vmem [shape: f32[3,8,8], index: 3, kind: input, shape index: {}]   ;;  %s1809_s2 = inlined_call_operand.vmem [shape: f32[1,8], index: 2, kind: input, shape index: {}]   ;;  %s1810_s4 = inlined_call_operand.vmem [shape: f32[1,8], index: 4, kind: input, shape index: {}]   ;;  %s1811_s11 = inlined_call_operand.vmem [shape: f32[2,48], index: 11, kind: input, shape index: {}]   ;;  %s1812_s7 = inlined_call_operand.vmem [shape: f32[8,8], index: 7, kind: input, shape index: {}]   ;;  %s1813_s9 = inlined_call_operand.vmem [shape: f32[8,8], index: 9, kind: input, shape index: {}]   ;;  %s1814_s8 = inlined_call_operand.vmem [shape: f32[1,8], index: 8, kind: input, shape index: {}]   ;;  %s1815_s5 = inlined_call_operand.vmem [shape: f32[12,8], index: 5, kind: input, shape index: {}]   ;;  %s1816_s12 = inlined_call_operand.vmem [shape: f32[48,2], index: 12, kind: input, shape index: {}]   ;;  %s1817_s10 = inlined_call_operand.vmem [shape: f32[1,8], index: 10, kind: input, shape index: {}]   ;;  %s1818_s6 = inlined_call_operand.vmem [shape: f32[1,8], index: 6, kind: input, shape index: {}]   ;;  %s1819_s13 = inlined_call_operand.vmem [shape: f32[16,8], index: 13, kind: output, shape index: {}]  }
   0x1   :  { %v50_v0 = vld [vmem:[%s1806_s1] sm:$0xff]  ;;  %v51_v1 = vld [vmem:[%s1806_s1 + $0x8] sm:$0xf]  ;;  %vm1547_vm3 = vmpackc.low %vm78_vm0, %vm1467_vm2  ;;  %vm298_vm4 = vcmask 64512  }
   0x2   :  { %v1412_v3 = vpack.c.bf16 %v51_v1, %v50_v0  ;;  %v1554_v4 = vld [vmem:[%s1807_s0] sm:$0xff]  ;;  %v1565_v5 = vld [vmem:[%s1807_s0 + $0x8] sm:$0xff]  ;;  %v1570_v6 = vld [vmem:[%s1807_s0 + $0x10] sm:$0xff]  ;;  %v184_v13 = vshrl.u32 %v183_v12, 7 }
   0x3   :  { %1321 = vmatprep.mubr.msk.f32.mxu0 %vm59_vm1, %v1554_v4  ;;  %v1579_v7 = vld [vmem:[%s1807_s0 + $0x18] sm:$0xff]  ;;  %v1584_v8 = vld [vmem:[%s1807_s0 + $0x20] sm:$0xff]  ;;  %v1593_v9 = vld [vmem:[%s1807_s0 + $0x28] sm:$0xff] }
   0x4   :  { %1414 = vmatprep.subr.msk.bf16.mxu0 %vm1547_vm3, %v1412_v3  ;;  %v1220_v10 = vld [vmem:[%s1808_s3 + $0x8] sm:$0xff]  ;;  %v1603_v11 = vld [vmem:[%s1808_s3] sm:$0xff]  ;;  %v185_v14 = vadd.s32 8, %v184_v13  ;;  %v1606_v15 = vmul.u32.u64.low 2863311531, %v184_v13  ;;  %v1607_v16 = vmul.u32.u64.high 2863311531, %v184_v13, %v1606_v15  ;;  %v186_v17 = vadd.s32 16, %v184_v13 }
   0x5   :  { %1417 = vmatpush3.bf16.msk.msra.mxu0 %vm1547_vm3, %v1412_v3  ;;  %1330 = vmatprep.subr.mxu1 %v1220_v10  ;;  %v187_v20 = vadd.s32 24, %v184_v13  ;;  %v188_v23 = vadd.s32 32, %v184_v13  ;;  %v1619_v27 = vadd.s32 40, %v184_v13  ;;  %v1212_v38 = vld [vmem:[%s1809_s2] ss:$0 sm:$0xff]  ;;  %v1233_v60 = vld [vmem:[%s1808_s3 + $0x10] sm:$0xff] }
   0x6   :  { %1331 = vmatpush3.msra.mxu1 %v1220_v10  ;;  %v1609_v18 = vmul.u32.u64.low 2863311531, %v185_v14  ;;  %v1610_v19 = vmul.u32.u64.high 2863311531, %v185_v14, %v1609_v18  ;;  %v1612_v21 = vmul.u32.u64.low 2863311531, %v186_v17  ;;  %v1613_v22 = vmul.u32.u64.high 2863311531, %v186_v17, %v1612_v21 }
   0x7   :  { %1341 = vmatprep.subr.mxu1 %v1603_v11  ;;  %v196_v24 = vshrl.u32 %v1607_v16, 4  ;;  %v1616_v25 = vmul.u32.u64.low 2863311531, %v187_v20  ;;  %v1617_v26 = vmul.u32.u64.high 2863311531, %v187_v20, %v1616_v25 }
   0x8   :  { %1322 = vmatmul.mubr.msk.f32.vlgmr.msra.gmra.mrb[0].mxu0 %vm59_vm1, %v1565_v5  ;;  %v1621_v28 = vmul.u32.u64.low 2863311531, %v188_v23  ;;  %v1622_v29 = vmul.u32.u64.high 2863311531, %v188_v23, %v1621_v28  ;;  %v207_v30 = vshrl.u32 %v1610_v19, 4  ;;  %v218_v34 = vshrl.u32 %v1613_v22, 4 }
   0x9   :  { %1324 = vmatprep.mubr.msk.f32.mxu0 %vm59_vm1, %v1570_v6  ;;  %v197_v31 = vmul.u32 24, %v196_v24  ;;  %v1626_v32 = vmul.u32.u64.low 2863311531, %v1619_v27  ;;  %v1627_v33 = vmul.u32.u64.high 2863311531, %v1619_v27, %v1626_v32  ;;  %v229_v37 = vshrl.u32 %v1617_v26, 4 }
   0xa   :  { %v208_v35 = vmul.u32 24, %v207_v30  ;;  %v219_v39 = vmul.u32 24, %v218_v34  ;;  %v240_v40 = vshrl.u32 %v1622_v29, 4 }
   0xb   :  { %v198_v36 = vsub.s32 %v184_v13, %v197_v31  ;;  %v230_v45 = vmul.u32 24, %v229_v37  ;;  %v251_v46 = vshrl.u32 %v1627_v33, 4 }
   0xc   :  { %1325 = vmatmul.mubr.msk.f32.gmra.mrb[2].mxu0 %vm59_vm1, %v1579_v7  ;;  %v209_v42 = vsub.s32 %v185_v14, %v208_v35  ;;  %v220_v48 = vsub.s32 %v186_v17, %v219_v39  ;;  %v241_v49 = vmul.u32 24, %v240_v40 }
   0xd   :  { %1327 = vmatprep.mubr.msk.f32.mxu0 %vm59_vm1, %v1584_v8  ;;  %vm256_vm5 = vcmp.ne.s32.totalorder %v198_v36, 0  ;;  %vm262_vm6 = vcmp.lt.s32.totalorder %v198_v36, 0  ;;  %v274_v53 = vadd.s32 24, %v198_v36  ;;  %v231_v57 = vsub.s32 %v187_v20, %v230_v45 }
   0xe   :  { %vm257_vm7 = vcmp.ne.s32.totalorder %v209_v42, 0  ;;  %vm1638_vm8 = vmand %vm262_vm6, %vm256_vm5  ;;  %vm263_vm9 = vcmp.lt.s32.totalorder %v209_v42, 0  ;;  %v252_v58 = vmul.u32 24, %v251_v46  ;;  %vm258_vm10 = vcmp.ne.s32.totalorder %v220_v48, 0 }
   0xf   :  { %vm264_vm11 = vcmp.lt.s32.totalorder %v220_v48, 0  ;;  %v242_v61 = vsub.s32 %v188_v23, %v241_v49  ;;  %v275_v63 = vadd.s32 24, %v209_v42  ;;  %v1651_v3 = vsel %vm1638_vm8, %v274_v53, %v198_v36  ;;  %vm1655_vm12 = vmand %vm263_vm9, %vm257_vm7  ;;  %v1240_v53 = vld [vmem:[%s1810_s4] ss:$0 sm:$0xff] }
  0x10   :  { %1328 = vmatmul.mubr.msk.f32.gmra.mrb[4].mxu0 %vm59_vm1, %v1593_v9  ;;  %v276_v12 = vadd.s32 24, %v220_v48  ;;  %vm270_vm13 = vmand %vm264_vm11, %vm258_vm10  ;;  %vm259_vm14 = vcmp.ne.s32.totalorder %v231_v57, 0  ;;  %vm265_vm15 = vcmp.lt.s32.totalorder %v231_v57, 0  ;;  %v253_v15 = vsub.s32 %v1619_v27, %v252_v58 }
  0x11   :  { %vm260_vm0 = vcmp.ne.s32.totalorder %v242_v61, 0  ;;  %vm266_vm2 = vcmp.lt.s32.totalorder %v242_v61, 0  ;;  %vm286_vm5 = vcmp.eq.s32.totalorder %v1651_v3, 0  ;;  %v281_v17 = vsel %vm1655_vm12, %v275_v63, %v209_v42  ;;  %vm1669_vm6 = vmand %vm265_vm15, %vm259_vm14 }
  0x12   :  { %v282_v19 = vsel %vm270_vm13, %v276_v12, %v220_v48  ;;  %v277_v21 = vadd.s32 24, %v231_v57  ;;  %v278_v22 = vadd.s32 24, %v242_v61  ;;  %vm272_vm7 = vmand %vm266_vm2, %vm260_vm0  ;;  %vm261_vm8 = vcmp.ne.s32.totalorder %v253_v15, 0  ;;  %v692_v12 = vld [vmem:[%s1811_s11] sm:$0x3] }
  0x13   :  { %vm267_vm9 = vcmp.lt.s32.totalorder %v253_v15, 0  ;;  %vm287_vm10 = vcmp.eq.s32.totalorder %v281_v17, 0  ;;  %vm288_vm11 = vcmp.eq.s32.totalorder %v282_v19, 0  ;;  %v279_v28 = vadd.s32 24, %v253_v15 }
  0x14   :  { %v283_v26 = vsel %vm1669_vm6, %v277_v21, %v231_v57  ;;  %v284_v27 = vsel %vm272_vm7, %v278_v22, %v242_v61  ;;  %vm273_vm12 = vmand %vm267_vm9, %vm261_vm8  ;;  %vm292_vm0 = vcmp.eq.s32.totalorder %v1651_v3, 23  ;;  %vm293_vm2 = vcmp.eq.s32.totalorder %v281_v17, 23  ;;  %v1066_v21 = vld [vmem:[%s1815_s5] sm:$0xff]  ;;  %v1067_v22 = vld [vmem:[%s1815_s5 + $0x8] sm:$0xf] }
  0x15   :  { %vm289_vm13 = vcmp.eq.s32.totalorder %v283_v26, 0  ;;  %vm290_vm14 = vcmp.eq.s32.totalorder %v284_v27, 0  ;;  %v285_v33 = vsel %vm273_vm12, %v279_v28, %v253_v15  ;;  %vm295_vm6 = vcmp.eq.s32.totalorder %v283_v26, 23  ;;  %v849_v15 = vld [vmem:[%s1813_s9] sm:$0xff] }
  0x16   :  { %vm291_vm15 = vcmp.eq.s32.totalorder %v285_v33, 0  ;;  %vm296_vm7 = vcmp.eq.s32.totalorder %v284_v27, 23  ;;  %vm297_vm8 = vcmp.eq.s32.totalorder %v285_v33, 23  ;;  %vm1469_vm9 = vmmov 0   ;;  %v940_v33 = vld [vmem:[%s1816_s12 + $0x20] sm:$0xff] }
  0x17   :  { %vm961_vm12 = vcmask 1041408  }
  0xdb   :  { %v1323_v41 = vpop.f32.mrb[0].mxu0 }
  0xdc   :  { %v154_v43 = vadd.f32 %v1323_v41, %v1212_v38  ;;  %v148_v44 = vpop.f32.mrb[1].mxu0 }
  0xdd   :  { %v149_v47 = vadd.f32 %v1212_v38, %v148_v44 }
  0xde   :  { %v178_v50 = vmax.f32 %v154_v43, 0.0 }
  0xdf   :  { %v177_v51 = vmax.f32 %v149_v47, 0.0  ;;  %v1326_v52 = vpop.f32.mrb[2].mxu0 }
  0xe0   :  { %300 = vst.msk [vmem:[#allocation2 + $0x10] sm:$0xff] %vm298_vm4, %v178_v50  ;;  %v164_v54 = vadd.f32 %v1326_v52, %v1212_v38  ;;  %v158_v55 = vpop.f32.mrb[3].mxu0  ;;  %v1470_v52 = vmov 0.0  }
  0xe1   :  { %299 = vst.msk [vmem:[#allocation2 + $0x8] sm:$0xff] %vm298_vm4, %v177_v51  ;;  %v159_v59 = vadd.f32 %v1212_v38, %v158_v55  ;;  %1332 = vmatprep.mubr.msk.f32.mxu1 %vm298_vm4, %v177_v51  ;;  %v1468_v51 = vmov 0.0|0.0   ;;  %1375 = vmatprep.mubr.msk.f32.mxu0 %vm1469_vm9, %v1470_v52 }
  0xe2   :  { %v180_v62 = vmax.f32 %v164_v54, 0.0  ;;  %1333 = vmatmul.mubr.msk.f32.vlgmr.msra.gmra.mrb[0].mxu1 %vm298_vm4, %v178_v50  ;;  %1418 = vmatprep.subr.bf16.mxu0 %v1468_v51 }
  0xe3   :  { %v179_v0 = vmax.f32 %v159_v59, 0.0  ;;  %v1329_v1 = vpop.f32.mrb[4].mxu0  ;;  %1342 = vmatpush3.msra.mxu1 %v1603_v11 }
  0xe4   :  { %302 = vst.msk [vmem:[#allocation2 + $0x20] sm:$0xff] %vm298_vm4, %v180_v62  ;;  %v174_v13 = vadd.f32 %v1329_v1, %v1212_v38  ;;  %v168_v14 = vpop.f32.mrb[5].mxu0  ;;  %1352 = vmatprep.subr.mxu1 %v1233_v60 }
  0xe5   :  { %301 = vst.msk [vmem:[#allocation2 + $0x18] sm:$0xff] %vm298_vm4, %v179_v0  ;;  %v169_v11 = vadd.f32 %v1212_v38, %v168_v14  ;;  %1335 = vmatprep.mubr.msk.f32.mxu1 %vm298_vm4, %v179_v0 }
  0xe6   :  { %v182_v16 = vmax.f32 %v174_v13, 0.0  ;;  %1336 = vmatmul.mubr.msk.f32.gmra.mrb[2].mxu1 %vm298_vm4, %v180_v62  ;;  %v767_v13 = vld [vmem:[%s1812_s7] sm:$0xff] }
  0xe7   :  { %v181_v18 = vmax.f32 %v169_v11, 0.0 }
  0xe8   :  { %304 = vst.msk [vmem:[#allocation2 + $0x30] sm:$0xff] %vm298_vm4, %v182_v16  ;;  %v305_v23 = vld [vmem:[#allocation2 + $0x7] sm:$0xff]  ;;  %v306_v25 = vld [vmem:[#allocation2 + $0xf] sm:$0xff] }
  0xe9   :  { %303 = vst.msk [vmem:[#allocation2 + $0x28] sm:$0xff] %vm298_vm4, %v181_v18  ;;  %1338 = vmatprep.mubr.msk.f32.mxu1 %vm298_vm4, %v181_v18  ;;  %v311_v24 = vsel %vm286_vm5, 0.0, %v305_v23  ;;  %v312_v30 = vsel %vm287_vm10, 0.0, %v306_v25  ;;  %v317_v38 = vld [vmem:[#allocation2 + $0x9] sm:$0xff]  ;;  %vm294_vm5 = vcmp.eq.s32.totalorder %v282_v19, 23  ;;  %vm693_vm10 = vcmask 392192  }
  0xea   :  { %1339 = vmatmul.mubr.msk.f32.gmra.mrb[4].mxu1 %vm298_vm4, %v182_v16  ;;  %v323_v40 = vsel %vm292_vm0, 0.0, %v317_v38  ;;  %v1242_v16 = vld [vmem:[%s1814_s8] ss:$0 sm:$0xff]  ;;  %v1427_v23 = vpack.c.bf16 %v1067_v22, %v1066_v21 }
  0xeb   :  { %1343 = vmatprep.mubr.msk.f32.mxu1 %vm298_vm4, %v311_v24  ;;  %v936_v24 = vld [vmem:[%s1816_s12] sm:$0xff] }
  0xec   :  { %v307_v29 = vld [vmem:[#allocation2 + $0x17] sm:$0xff]  ;;  %v308_v32 = vld [vmem:[#allocation2 + $0x1f] sm:$0xff] }
  0xed   :  { %v313_v31 = vsel %vm288_vm11, 0.0, %v307_v29  ;;  %v314_v35 = vsel %vm289_vm13, 0.0, %v308_v32  ;;  %v318_v41 = vld [vmem:[#allocation2 + $0x11] sm:$0xff]  ;;  %v319_v42 = vld [vmem:[#allocation2 + $0x19] sm:$0xff]  ;;  %vm942_vm11 = vcmask 15360  }
  0xee   :  { %1344 = vmatmul.mubr.msk.f32.vlgmr.msra.gmra.mrb[0].mxu1 %vm298_vm4, %v312_v30  ;;  %v324_v43 = vsel %vm293_vm2, 0.0, %v318_v41  ;;  %v325_v44 = vsel %vm294_vm5, 0.0, %v319_v42  ;;  %v1244_v25 = vld [vmem:[%s1817_s10] ss:$0 sm:$0xff]  ;;  %v939_v32 = vld [vmem:[%s1816_s12 + $0x18] sm:$0xff] }
  0xef   :  { %1346 = vmatprep.mubr.msk.f32.mxu1 %vm298_vm4, %v313_v31  ;;  %1353 = vmatpush3.msra.mxu1 %v1233_v60  ;;  %v322_v49 = vld [vmem:[#allocation2 + $0x31] sm:$0xff] }
  0xf0   :  { %v309_v34 = vld [vmem:[#allocation2 + $0x27] sm:$0xff]  ;;  %v310_v37 = vld [vmem:[#allocation2 + $0x2f] sm:$0xff]  ;;  %v328_v50 = vsel %vm297_vm8, 0.0, %v322_v49  ;;  %1433 = vmatprep.subr.msk.bf16.mxu1 %vm1547_vm3, %v1427_v23 }
  0xf1   :  { %v315_v36 = vsel %vm290_vm14, 0.0, %v309_v34  ;;  %v316_v39 = vsel %vm291_vm15, 0.0, %v310_v37  ;;  %v320_v45 = vld [vmem:[#allocation2 + $0x21] sm:$0xff]  ;;  %v321_v46 = vld [vmem:[#allocation2 + $0x29] sm:$0xff] }
  0xf2   :  { %1347 = vmatmul.mubr.msk.f32.gmra.mrb[2].mxu1 %vm298_vm4, %v314_v35  ;;  %v326_v47 = vsel %vm295_vm6, 0.0, %v320_v45  ;;  %v327_v48 = vsel %vm296_vm7, 0.0, %v321_v46  ;;  %v941_v34 = vld [vmem:[%s1816_s12 + $0x28] sm:$0xff] }
  0xf3   :  { %1349 = vmatprep.mubr.msk.f32.mxu1 %vm298_vm4, %v315_v36 }
  0xf6   :  { %1350 = vmatmul.mubr.msk.f32.gmra.mrb[4].mxu1 %vm298_vm4, %v316_v39  ;;  %v1254_v39 = vld [vmem:[%s1818_s6] ss:$0 sm:$0xff] }
  0xf7   :  { %1354 = vmatprep.mubr.msk.f32.mxu1 %vm298_vm4, %v323_v40 }
  0xfa   :  { %1355 = vmatmul.mubr.msk.f32.vlgmr.msra.gmra.mrb[0].mxu1 %vm298_vm4, %v324_v43 }
  0xfb   :  { %1357 = vmatprep.mubr.msk.f32.mxu1 %vm298_vm4, %v325_v44  ;;  %1434 = vmatpush3.bf16.msk.msra.mxu1 %vm1547_vm3, %v1427_v23 }
  0xfe   :  { %1358 = vmatmul.mubr.msk.f32.gmra.mrb[2].mxu1 %vm298_vm4, %v326_v47 }
  0xff   :  { %1360 = vmatprep.mubr.msk.f32.mxu1 %vm298_vm4, %v327_v48 }
 0x102   :  { %1361 = vmatmul.mubr.msk.f32.gmra.mrb[4].mxu1 %vm298_vm4, %v328_v50 }
 0x103   :  { %1406 = vmatprep.mubr.msk.f32.mxu1 %vm59_vm1, %v1570_v6 }
 0x106   :  { %1407 = vmatmul.mubr.msk.f32.vlgmr.msra.gmra.mrb[6].mxu1 %vm59_vm1, %v1579_v7 }
 0x107   :  { %1409 = vmatprep.mubr.msk.f32.mxu1 %vm59_vm1, %v1584_v8  ;;  %v937_v8 = vld [vmem:[%s1816_s12 + $0x8] sm:$0xff] }
 0x10a   :  { %1410 = vmatmul.mubr.msk.f32.gmra.mrb[8].mxu1 %vm59_vm1, %v1593_v9  ;;  %v938_v9 = vld [vmem:[%s1816_s12 + $0x10] sm:$0xff] }
 0x1cd   :  { %v1356_v54 = vpop.f32.mrb[0].mxu1 }
 0x1ce   :  { %v1698_v55 = vadd.f32 %v1356_v54, %v1240_v53  ;;  %v644_v56 = vpop.f32.mrb[1].mxu1 }
 0x1cf   :  { %v1700_v57 = vadd.f32 %v1240_v53, %v644_v56 }
 0x1d1   :  { %v1419_v58 = vpack.c.bf16 %v1698_v55, %v1700_v57  ;;  %v1359_v6 = vpop.f32.mrb[2].mxu1 }
 0x1d2   :  { %v1704_v59 = vadd.f32 %v1359_v6, %v1240_v53  ;;  %v654_v60 = vpop.f32.mrb[3].mxu1 }
 0x1d3   :  { %v1706_v61 = vadd.f32 %v1240_v53, %v654_v60  ;;  %1420 = vmatpush3.bf16.msra.mxu0 %v1419_v58 }
 0x1d4   :  { %1421 = vmatprep.subr.bf16.mxu0 %v1468_v51 }
 0x1d5   :  { %v1422_v62 = vpack.c.bf16 %v1704_v59, %v1706_v61  ;;  %v1362_v63 = vpop.f32.mrb[4].mxu1 }
 0x1d6   :  { %v1710_v0 = vadd.f32 %v1362_v63, %v1240_v53  ;;  %v664_v1 = vpop.f32.mrb[5].mxu1 }
 0x1d7   :  { %v1712_v3 = vadd.f32 %v1240_v53, %v664_v1  ;;  %1423 = vmatpush3.bf16.msra.mxu0 %v1422_v62 }
 0x1d8   :  { %1424 = vmatprep.subr.bf16.mxu0 %v1468_v51 }
 0x1d9   :  { %v1425_v10 = vpack.c.bf16 %v1710_v0, %v1712_v3  ;;  %v1408_v2 = vpop.f32.mrb[6].mxu1 }
 0x1da   :  { %v1154_v35 = vpop.f32.mrb[7].mxu1  ;;  %v1160_v41 = vadd.f32 %v1408_v2, %v1254_v39 }
 0x1db   :  { %1426 = vmatpush3.bf16.msra.mxu0 %v1425_v10  ;;  %v1155_v43 = vadd.f32 %v1254_v39, %v1154_v35 }
 0x1dc   :  { %1378 = vmatprep.subr.mxu0 %v1470_v52 }
 0x1dd   :  { %v1411_v36 = vpop.f32.mrb[8].mxu1 }
 0x1de   :  { %1376 = vmatmul.mubr.msk.f32.vlgmr.msra.gmra.mrb[6].mxu0 %vm693_vm10, %v692_v12  ;;  %v1164_v37 = vpop.f32.mrb[9].mxu1 }
 0x1df   :  { %1380 = vmatprep.mubr.msk.f32.mxu0 %vm1469_vm9, %v1470_v52  ;;  %1379 = vmatpush3.msra.mxu0 %v767_v13  ;;  %v1165_v49 = vadd.f32 %v1254_v39, %v1164_v37 }
 0x1e0   :  { %1383 = vmatprep.subr.mxu0 %v1470_v52 }
 0x2b1   :  { %v763_v14 = vpop.f32.mrb[6].mxu0 }
 0x2b2   :  { %v1377_v11 = vpop.f32.mrb[7].mxu0  ;;  %1381 = vmatmul.mubr.msk.f32.vlgmr.msra.gmra.mrb[8].mxu0 %vm298_vm4, %v763_v14 }
 0x2b3   :  { %1385 = vmatprep.mubr.msk.f32.mxu0 %vm1469_vm9, %v1470_v52  ;;  %1384 = vmatpush3.msra.mxu0 %v849_v15 }
 0x385   :  { %v844_v17 = vpop.f32.mrb[8].mxu0 }
 0x386   :  { %v845_v18 = vadd.f32 %v1242_v16, %v844_v17  ;;  %v1382_v19 = vpop.f32.mrb[9].mxu0 }
 0x388   :  { %v848_v20 = vmax.f32 %v845_v18, 0.0 }
 0x38a   :  { %1386 = vmatmul.mubr.msk.f32.vlgmr.msra.gmra.mrb[10].mxu0 %vm298_vm4, %v848_v20 }
 0x38b   :  { %1390 = vmatprep.mubr.msk.f32.mxu0 %vm942_vm11, %v936_v24 }
 0x45d   :  { %v926_v26 = vpop.f32.mrb[10].mxu0 }
 0x45e   :  { %v927_v27 = vadd.f32 %v1244_v25, %v926_v26  ;;  %v1387_v28 = vpop.f32.mrb[11].mxu0 }
 0x460   :  { %v1246_v29 = vmul.f32 -1.442695, %v927_v27 }
 0x462   :  { %1463 = vpow2.f32 %v1246_v29 }
 0x46c   :  { %v1464_v30 = vpop.eup %1463 }
 0x46d   :  { %v933_v31 = vadd.f32 1.0, %v1464_v30 }
 0x46f   :  { %1465 = vrcp.f32 %v933_v31 }
 0x479   :  { %v1466_v7 = vpop.eup %1465 }
 0x47a   :  { %1388 = vmatprep.subr.msk.mxu0 %vm961_vm12, %v1466_v7 }
 0x47b   :  { %1389 = vmatpush3.msk.msra.mxu0 %vm961_vm12, %v1466_v7 }
 0x47c   :  { %1391 = vmatmul.mubr.msk.f32.vlgmr.msra.gmra.mrb[12].mxu0 %vm942_vm11, %v937_v8  ;;  %1429 = vmatprep.subr.msk.bf16.mxu0 %vm1547_vm3, %v1427_v23 }
 0x47d   :  { %1393 = vmatprep.mubr.msk.f32.mxu0 %vm942_vm11, %v938_v9  ;;  %1432 = vmatpush3.bf16.msk.msra.mxu0 %vm1547_vm3, %v1427_v23 }
 0x480   :  { %1394 = vmatmul.mubr.msk.f32.gmra.mrb[14].mxu0 %vm942_vm11, %v939_v32 }
 0x481   :  { %1396 = vmatprep.mubr.msk.f32.mxu0 %vm942_vm11, %v940_v33 }
 0x484   :  { %1397 = vmatmul.mubr.msk.f32.gmra.mrb[16].mxu0 %vm942_vm11, %v941_v34 }
 0x485   :  { %1403 = vmatprep.mubr.msk.f32.mxu0 %vm59_vm1, %v1554_v4 }
 0x488   :  { %1404 = vmatmul.mubr.msk.f32.vlgmr.msra.gmra.mrb[18].mxu0 %vm59_vm1, %v1565_v5  ;;  %v1170_v5 = vadd.f32 %v1411_v36, %v1254_v39 }
 0x54f   :  { %v1392_v38 = vpop.f32.mrb[12].mxu0 }
 0x550   :  { %v1031_v40 = vpop.f32.mrb[13].mxu0 }
 0x551   :  { %v1060_v63 = vmul.f32 %v1031_v40, %v1700_v57 }
 0x553   :  { %v1395_v42 = vpop.f32.mrb[14].mxu0 }
 0x554   :  { %v1063_v44 = vmul.f32 %v1395_v42, %v1704_v59  ;;  %v1041_v45 = vpop.f32.mrb[15].mxu0  ;;  %v1061_v59 = vmul.f32 %v1392_v38, %v1698_v55 }
 0x555   :  { %v1062_v4 = vmul.f32 %v1041_v45, %v1706_v61 }
 0x556   :  { %v1176_v46 = vadd.f32 %v1160_v41, %v1063_v44 }
 0x557   :  { %v1175_v47 = vadd.f32 %v1155_v43, %v1062_v4  ;;  %v1398_v48 = vpop.f32.mrb[16].mxu0 }
 0x558   :  { %v1182_v50 = vmax.f32 %v1176_v46, 0.0  ;;  %v1065_v51 = vmul.f32 %v1398_v48, %v1710_v0  ;;  %v1051_v52 = vpop.f32.mrb[17].mxu0 }
 0x559   :  { %v1181_v53 = vmax.f32 %v1175_v47, 0.0  ;;  %v1064_v54 = vmul.f32 %v1051_v52, %v1712_v3 }
 0x55a   :  { %1188 = vst.msk [vmem:[#allocation2 + $0x18] sm:$0xff] %vm298_vm4, %v1182_v50  ;;  %v1178_v56 = vadd.f32 %v1170_v5, %v1065_v51 }
 0x55b   :  { %1187 = vst.msk [vmem:[#allocation2 + $0x10] sm:$0xff] %vm298_vm4, %v1181_v53  ;;  %v1177_v58 = vadd.f32 %v1165_v49, %v1064_v54  ;;  %v1405_v6 = vpop.f32.mrb[18].mxu0 }
 0x55c   :  { %v1184_v60 = vmax.f32 %v1178_v56, 0.0  ;;  %v1150_v61 = vadd.f32 %v1405_v6, %v1254_v39  ;;  %v1144_v62 = vpop.f32.mrb[19].mxu0 }
 0x55d   :  { %v1183_v1 = vmax.f32 %v1177_v58, 0.0  ;;  %v1145_v0 = vadd.f32 %v1254_v39, %v1144_v62 }
 0x55e   :  { %1190 = vst.msk [vmem:[#allocation2 + $0x28] sm:$0xff] %vm298_vm4, %v1184_v60  ;;  %v1174_v10 = vadd.f32 %v1150_v61, %v1061_v59 }
 0x55f   :  { %1189 = vst.msk [vmem:[#allocation2 + $0x20] sm:$0xff] %vm298_vm4, %v1183_v1  ;;  %v1173_v3 = vadd.f32 %v1145_v0, %v1060_v63 }
 0x560   :  { %v1180_v12 = vmax.f32 %v1174_v10, 0.0 }
 0x561   :  { %v1179_v13 = vmax.f32 %v1173_v3, 0.0 }
 0x562   :  { %1186 = vst.msk [vmem:[#allocation2 + $0x8] sm:$0xff] %vm298_vm4, %v1180_v12 }
 0x563   :  { %1185 = vst.msk [vmem:[#allocation2] sm:$0xff] %vm298_vm4, %v1179_v13 }
 0x566   :  { %v1200_v55 = vld [vmem:[#allocation2 + $0x18] ss:$3 sm:$0xff]  ;;  %v1202_v14 = vld [vmem:[#allocation2 + $0x19] ss:$3 sm:$0xff]  ;;  %v1205_v15 = vld [vmem:[#allocation2 + $0x1a] ss:$3 sm:$0xff] }
 0x567   :  { %v1203_v11 = vmax.f32 %v1200_v55, %v1202_v14 }
 0x569   :  { %v1206_v16 = vmax.f32 %v1203_v11, %v1205_v15 }
 0x56a   :  { %v1191_v57 = vld [vmem:[#allocation2] ss:$3 sm:$0xff]  ;;  %v1193_v17 = vld [vmem:[#allocation2 + $0x1] ss:$3 sm:$0xff]  ;;  %v1196_v19 = vld [vmem:[#allocation2 + $0x2] ss:$3 sm:$0xff] }
 0x56b   :  { %v1194_v18 = vmax.f32 %v1191_v57, %v1193_v17  ;;  %1207 = vst.msk [vmem:[%s1819_s13 + $0x8] sm:$0xff] %vm298_vm4, %v1206_v16 }
 0x56d   :  { %v1197_v20 = vmax.f32 %v1194_v18, %v1196_v19 }
 0x56f   :  { %1198 = vst.msk [vmem:[%s1819_s13] sm:$0xff] %vm298_vm4, %v1197_v20 }

</bundles_post_ra>
